<compile_context>
chip_gen: v5e
topology: v5e:2x2
jax: 0.10.0
libtpu: 0.0.40
codegen_flags: <defaults>
</compile_context>

<pallas_src>
import numpy as np

import jax
import jax.numpy as jnp
from jax.experimental import pallas as pl
from jax.experimental.pallas import tpu as pltpu


# ----------------------------------------------------------------------------
# host-side helpers (shape-only constants, plain numpy, run once)
# ----------------------------------------------------------------------------
def _bilinear_matrix(out_size, in_size):
    """(out, in) interpolation matrix matching torch F.interpolate(mode='bilinear',
    align_corners=False).  Rows sum to 1 (so the per-channel BN bias commutes)."""
    scale = in_size / out_size
    o = np.arange(out_size, dtype=np.float64)
    src = (o + 0.5) * scale - 0.5
    src = np.maximum(src, 0.0)                 # torch clamps negative src coords
    i0 = np.minimum(np.floor(src).astype(np.int64), in_size - 1)
    i1 = np.minimum(i0 + 1, in_size - 1)
    l1 = (src - i0).astype(np.float32)
    l0 = 1.0 - l1
    m = np.zeros((out_size, in_size), dtype=np.float32)
    np.add.at(m, (np.arange(out_size), i0), l0)
    np.add.at(m, (np.arange(out_size), i1), l1)
    return m                                    # numpy (out, in), f32


def _stride2_col_select(w, W):
    """T[kw, iw, ow] = 1 iff iw == 2*ow + kw - 1 (3x3 stride-2 'same' conv column taps;
    out-of-range columns are the zero padding)."""
    T = np.zeros((3, W, w), np.float32)
    for kw in range(3):
        for ow in range(w):
            iw = 2 * ow + kw - 1
            if 0 <= iw < W:
                T[kw, iw, ow] = 1.0
    return T


def init_params(key, in_channels, out_channels, eps=1e-3):
    """Deterministic synthetic parameters with the same shapes as the PyTorch module."""
    c0_in, c1_in = in_channels
    c0_out, c1_out = out_channels
    ks = jax.random.split(key, 10)
    # residual_layer_1_2 : ConvBn(in=c1_in, out=c0_out, k=1, padding='same')
    w_1x1 = 0.1 * jax.random.normal(ks[0], (c0_out, c1_in, 1, 1), jnp.float32)
    g0 = 1.0 + 0.1 * jax.random.normal(ks[1], (c0_out,), jnp.float32)
    b0 = 0.1 * jax.random.normal(ks[2], (c0_out,), jnp.float32)
    rm0 = 0.1 * jax.random.normal(ks[3], (c0_out,), jnp.float32)
    rv0 = jnp.abs(jax.random.normal(ks[4], (c0_out,), jnp.float32)) + 0.5
    # residual_layer_2_1_1 : ConvBn(in=c0_in, out=c1_out, k=3, stride=2, padding='same')
    w_3x3 = 0.1 * jax.random.normal(ks[5], (c1_out, c0_in, 3, 3), jnp.float32)
    g1 = 1.0 + 0.1 * jax.random.normal(ks[6], (c1_out,), jnp.float32)
    b1 = 0.1 * jax.random.normal(ks[7], (c1_out,), jnp.float32)
    rm1 = 0.1 * jax.random.normal(ks[8], (c1_out,), jnp.float32)
    rv1 = jnp.abs(jax.random.normal(ks[9], (c1_out,), jnp.float32)) + 0.5

    scale0 = g0 / jnp.sqrt(rv0 + eps)
    bias0 = b0 - rm0 * scale0
    scale1 = g1 / jnp.sqrt(rv1 + eps)
    bias1 = b1 - rm1 * scale1

    return dict(
        w_3x3_raw=w_3x3,                                      # (C1out, C0in, 3, 3)
        w_1x1_mat=jnp.transpose(w_1x1[:, :, 0, 0], (1, 0)),   # (C1in, C0out)
        sb0=jnp.stack([scale0, bias0]),                        # (2, C0out)
        sb1=jnp.stack([scale1, bias1]),                        # (2, C1out)
    )


def prepare_operands(params, N, H, W):
    """Build ALL kernel weight/constant operands once (host-side numpy).  Called at init
    time; the jitted forward only moves activations and calls the kernel."""
    w1 = np.asarray(params["w_1x1_mat"], np.float32)           # (C1, C0o)
    scale0, bias0 = np.asarray(params["sb0"], np.float32)      # (C0o,), (C0o,)
    scale1, bias1 = np.asarray(params["sb1"], np.float32)      # (C1o,), (C1o,)
    w3 = np.asarray(params["w_3x3_raw"], np.float32)           # (C1o, C0, 3, 3)
    C1, C0o = w1.shape
    C1o, C0 = w3.shape[:2]
    h, w = H // 2, W // 2
    eyeN = np.eye(N, dtype=np.float32)

    # --- branch 0: 1x1 conv (BN scale folded) fused with the W-axis bilinear up-matrix:
    #     kron(I_{wN}, w1s) @ kron(uw.T, I_{N*C0o}) == kron(uw.T, kron(I_N, w1s))
    w1s = w1 * scale0[None, :]                                  # (C1, C0o)
    uw = _bilinear_matrix(W, w)                                 # (W, w)
    wfused = np.kron(uw.T, np.kron(eyeN, w1s))                  # (w*N*C1, W*N*C0o)
    uh = _bilinear_matrix(H, h)                                 # (H, h)

    # --- branch 1: per-kh lane matrix folds kw taps + stride-2 column gather + channel mix
    #     + BN scale.  Stacked kh-major along rows so the kernel runs ONE matmul with
    #     K = 3*W*N*C0 against the concatenated [kh=0 | kh=1 | kh=2] row slabs.
    w3s = np.transpose(w3, (2, 3, 1, 0)) * scale1               # (3, 3, C0, C1o)
    T = _stride2_col_select(w, W)                                # (3, W, w)
    m_taps = []
    for kh in range(3):
        mk = np.zeros((W * N * C0, w * N * C1o), np.float32)
        for kw in range(3):
            mk += np.kron(T[kw], np.kron(eyeN, w3s[kh, kw]))
        m_taps.append(mk)
    m_full = np.concatenate(m_taps, axis=0)                      # (3*W*N*C0, w*N*C1o)

    return dict(
        wfused=jnp.asarray(wfused),                               # (w*N*C1, W*N*C0o) f32
        uh=jnp.asarray(uh),                                       # (H, h)            f32
        m_full=jnp.asarray(m_full),                               # (3*W*N*C0, w*N*C1o)
        bias0_t=jnp.asarray(np.tile(bias0, W * N)[None, :]),      # (1, W*N*C0o)
        bias1_t=jnp.asarray(np.tile(bias1, w * N)[None, :]),      # (1, w*N*C1o)
    )


# ----------------------------------------------------------------------------
# fused Pallas kernel (whole batch, both branches, single grid step, all f32)
# ----------------------------------------------------------------------------
def _fuse_kernel(x0_ref, x1_ref, wf_ref, uh_ref, m_ref, bias0_ref, bias1_ref,
                 o0_ref, o1_ref):
    """Layouts (batch folded into the lane dim, channels innermost):
       x0_ref    : (H, W*N*C0)            high-res input
       x1_ref    : (h, w*N*C1)            low-res input
       wf_ref    : (w*N*C1, W*N*C0o)      1x1 conv + BN scale + W-axis bilinear (fused)
       uh_ref    : (H, h)                 bilinear up-matrix along H
       m_ref     : (3*W*N*C0, w*N*C1o)    stacked kh taps of the 3x3 stride-2 conv
       bias0_ref : (1, W*N*C0o)           folded BN bias, tiled along W*N
       bias1_ref : (1, w*N*C1o)
       o0_ref    : (H, W*N*C0o)
       o1_ref    : (h, w*N*C1o)
    """
    h = x1_ref.shape[0]
    x0 = x0_ref[...]                                             # (H, W*N*C0)
    x1 = x1_ref[...]                                             # (h, w*N*C1)

    # ---- branch 0: (conv1x1 + BN scale + W-upsample) matmul, then H-upsample matmul ----
    t = jnp.dot(x1, wf_ref[...], preferred_element_type=jnp.float32)   # (h, W*N*C0o)
    up = jnp.dot(uh_ref[...], t, preferred_element_type=jnp.float32)   # (H, W*N*C0o)
    o0_ref[...] = jnp.maximum(x0 + up + bias0_ref[0], 0.0)

    # ---- branch 1: 3x3 stride-2 conv (+BN scale) as ONE matmul over 3 row-tap slabs ----
    # Row taps gathered with strided sublane slices; kh=0 needs a zero top-padding row.
    rows_k1 = x0_ref[pl.ds(0, h, stride=2), :]                   # ih = 0,2,...,H-2 (kh=1)
    rows_k2 = x0_ref[pl.ds(1, h, stride=2), :]                   # ih = 1,3,...,H-1 (kh=2)
    zero_row = jnp.zeros((1, rows_k1.shape[1]), jnp.float32)
    rows_k0 = jnp.concatenate([zero_row, rows_k2[: h - 1, :]], axis=0)  # ih = -1,1,...,H-3
    rows_cat = jnp.concatenate([rows_k0, rows_k1, rows_k2], axis=1)     # (h, 3*W*N*C0)
    acc = jnp.dot(rows_cat, m_ref[...], preferred_element_type=jnp.float32)  # (h, w*N*C1o)
    o1_ref[...] = jnp.maximum(x1 + acc + bias1_ref[0], 0.0)


# ----------------------------------------------------------------------------
# wrapper: NCHW <-> (rows, W*N*C) lane-dense layout; operands precomputed at init
# ----------------------------------------------------------------------------
@jax.jit
def fuse_layers_forward(x0_nchw, x1_nchw, ops):
    N, C0, H, W = x0_nchw.shape
    _, C1, h, w = x1_nchw.shape
    C0o = ops["bias0_t"].shape[1] // (W * N)
    C1o = ops["bias1_t"].shape[1] // (w * N)

    # TODO(synk): layout plumbing; neighbouring ops should carry the slab layout directly.
    x0_2d = jnp.transpose(x0_nchw, (2, 3, 0, 1)).reshape(H, W * N * C0)
    x1_2d = jnp.transpose(x1_nchw, (2, 3, 0, 1)).reshape(h, w * N * C1)

    out0_2d, out1_2d = pl.pallas_call(
        _fuse_kernel,
        out_shape=(jax.ShapeDtypeStruct((H, W * N * C0o), jnp.float32),
                   jax.ShapeDtypeStruct((h, w * N * C1o), jnp.float32)),
        grid=(1,),
        in_specs=[
            pl.BlockSpec((H, W * N * C0), lambda i: (0, 0)),
            pl.BlockSpec((h, w * N * C1), lambda i: (0, 0)),
            pl.BlockSpec((w * N * C1, W * N * C0o), lambda i: (0, 0)),
            pl.BlockSpec((H, h), lambda i: (0, 0)),
            pl.BlockSpec((3 * W * N * C0, w * N * C1o), lambda i: (0, 0)),
            pl.BlockSpec((1, W * N * C0o), lambda i: (0, 0)),
            pl.BlockSpec((1, w * N * C1o), lambda i: (0, 0)),
        ],
        out_specs=(pl.BlockSpec((H, W * N * C0o), lambda i: (0, 0)),
                   pl.BlockSpec((h, w * N * C1o), lambda i: (0, 0))),
        compiler_params=pltpu.CompilerParams(dimension_semantics=("arbitrary",)),
    )(x0_2d, x1_2d, ops["wfused"], ops["uh"], ops["m_full"],
      ops["bias0_t"], ops["bias1_t"])

    # (H, W*N*C) -> NCHW
    out0 = jnp.transpose(out0_2d.reshape(H, W, N, C0o), (2, 3, 0, 1))
    out1 = jnp.transpose(out1_2d.reshape(h, w, N, C1o), (2, 3, 0, 1))
    return out0, out1


# ----------------------------------------------------------------------------
# plain-JAX f32 reference (original op order) for a correctness check
# ----------------------------------------------------------------------------
def reference_forward(x0_nchw, x1_nchw, params):
    x0 = jnp.transpose(x0_nchw, (0, 2, 3, 1))
    x1 = jnp.transpose(x1_nchw, (0, 2, 3, 1))
    N, H, W, C0 = x0.shape
    _, h, w, C1 = x1.shape
    uh = jnp.asarray(_bilinear_matrix(H, h))
    uw = jnp.asarray(_bilinear_matrix(W, w))
    s0, b0 = params["sb0"][0], params["sb0"][1]
    s1, b1 = params["sb1"][0], params["sb1"][1]
    # branch 0: conv1x1 -> BN -> bilinear upsample -> add -> relu
    y = jnp.einsum("nhwc,cd->nhwd", x1, params["w_1x1_mat"]) * s0 + b0
    up = jnp.einsum("Hh,Ww,nhwd->nHWd", uh, uw, y)
    r0 = jax.nn.relu(x0 + up)
    # branch 1: conv3x3 stride2 -> BN -> add -> relu
    w_hwio = jnp.transpose(params["w_3x3_raw"], (2, 3, 1, 0))
    yc = jax.lax.conv_general_dilated(
        x0, w_hwio, (2, 2), ((1, 1), (1, 1)),
        dimension_numbers=("NHWC", "HWIO", "NHWC"))
    r1 = jax.nn.relu(x1 + yc * s1 + b1)
    return jnp.transpose(r0, (0, 3, 1, 2)), jnp.transpose(r1, (0, 3, 1, 2))


# ----------------------------------------------------------------------------
if __name__ == "__main__":
    key = jax.random.PRNGKey(0)
    in_channels = [4, 8]
    out_channels = [4, 8]
    N, H, W = 2, 16, 16     # W*N*C0 = 128 and (W//2)*N*C1 = 128 -> lane-dense tiles

    k1, k2, k3 = jax.random.split(key, 3)
    x0 = jax.random.normal(k1, (N, in_channels[0], H, W), jnp.float32)            # NCHW
    x1 = jax.random.normal(k2, (N, in_channels[1], H // 2, W // 2), jnp.float32)  # NCHW
    params = init_params(k3, in_channels, out_channels)

    # all weight/constant operands built exactly once, outside the jitted forward
    ops = prepare_operands(params, N, H, W)

    out0, out1 = fuse_layers_forward(x0, x1, ops)
    jax.block_until_ready((out0, out1))

    r0, r1 = reference_forward(x0, x1, params)
    assert out0.shape == (N, out_channels[0], H, W)
    assert out1.shape == (N, out_channels[1], H // 2, W // 2)
    # f32 end-to-end -> tight tolerance vs. the f32 reference.
    assert jnp.allclose(out0, r0, atol=1e-4, rtol=1e-4)
    assert jnp.allclose(out1, r1, atol=1e-4, rtol=1e-4)

    print("KERNEL_OK")
</pallas_src>

<mosaic_0001>
module attributes {stable_mosaic.version = 11 : i64} {
  func.func @_fuse_kernel(%arg0: i32, %arg1: memref<16x128xf32, #tpu.memory_space<vmem>>, %arg2: memref<8x128xf32, #tpu.memory_space<vmem>>, %arg3: memref<128x128xf32, #tpu.memory_space<vmem>>, %arg4: memref<16x8xf32, #tpu.memory_space<vmem>>, %arg5: memref<384x128xf32, #tpu.memory_space<vmem>>, %arg6: memref<1x128xf32, #tpu.memory_space<vmem>>, %arg7: memref<1x128xf32, #tpu.memory_space<vmem>>, %arg8: memref<16x128xf32, #tpu.memory_space<vmem>>, %arg9: memref<8x128xf32, #tpu.memory_space<vmem>>) attributes {dimension_semantics = [#tpu.dimension_semantics<arbitrary>], iteration_bounds = array<i64: 1>, scalar_prefetch = 0 : i64, scratch_operands = 0 : i64, tpu.core_type = #tpu.core_type<tc>, window_params = [{pipeline_mode = #tpu.pipeline_mode<synchronous>, transform_indices = @transform_0, window_bounds = array<i64: 16, 128>}, {pipeline_mode = #tpu.pipeline_mode<synchronous>, transform_indices = @transform_1, window_bounds = array<i64: 8, 128>}, {pipeline_mode = #tpu.pipeline_mode<synchronous>, transform_indices = @transform_2, window_bounds = array<i64: 128, 128>}, {pipeline_mode = #tpu.pipeline_mode<synchronous>, transform_indices = @transform_3, window_bounds = array<i64: 16, 8>}, {pipeline_mode = #tpu.pipeline_mode<synchronous>, transform_indices = @transform_4, window_bounds = array<i64: 384, 128>}, {pipeline_mode = #tpu.pipeline_mode<synchronous>, transform_indices = @transform_5, window_bounds = array<i64: 1, 128>}, {pipeline_mode = #tpu.pipeline_mode<synchronous>, transform_indices = @transform_6, window_bounds = array<i64: 1, 128>}, {pipeline_mode = #tpu.pipeline_mode<synchronous>, transform_indices = @transform_7, window_bounds = array<i64: 16, 128>}, {pipeline_mode = #tpu.pipeline_mode<synchronous>, transform_indices = @transform_8, window_bounds = array<i64: 8, 128>}]} {
    %c0 = arith.constant 0 : index
    %c0_0 = arith.constant 0 : index
    %0 = vector.load %arg1[%c0, %c0_0] : memref<16x128xf32, #tpu.memory_space<vmem>>, vector<16x128xf32>
    %c0_1 = arith.constant 0 : index
    %c0_2 = arith.constant 0 : index
    %1 = vector.load %arg2[%c0_1, %c0_2] : memref<8x128xf32, #tpu.memory_space<vmem>>, vector<8x128xf32>
    %c0_3 = arith.constant 0 : index
    %c0_4 = arith.constant 0 : index
    %2 = vector.load %arg3[%c0_3, %c0_4] : memref<128x128xf32, #tpu.memory_space<vmem>>, vector<128x128xf32>
    %cst = arith.constant dense<0.000000e+00> : vector<8x128xf32>
    %3 = tpu.matmul %1, %2, %cst {dimension_numbers = #tpu.dot_dimension_numbers<[1], [0], [0], [1], [0, 0, 1, 1], [], []>} : vector<8x128xf32>, vector<128x128xf32>, vector<8x128xf32> -> vector<8x128xf32>
    %c0_5 = arith.constant 0 : index
    %c0_6 = arith.constant 0 : index
    %4 = vector.load %arg4[%c0_5, %c0_6] : memref<16x8xf32, #tpu.memory_space<vmem>>, vector<16x8xf32>
    %cst_7 = arith.constant dense<0.000000e+00> : vector<16x128xf32>
    %5 = tpu.matmul %4, %3, %cst_7 {dimension_numbers = #tpu.dot_dimension_numbers<[1], [0], [0], [1], [0, 0, 1, 1], [], []>} : vector<16x8xf32>, vector<8x128xf32>, vector<16x128xf32> -> vector<16x128xf32>
    %6 = arith.addf %0, %5 : vector<16x128xf32>
    %c0_8 = arith.constant 0 : index
    %c0_9 = arith.constant 0 : index
    %7 = vector.load %arg6[%c0_8, %c0_9] : memref<1x128xf32, #tpu.memory_space<vmem>>, vector<1x128xf32>
    %8 = vector.shape_cast %7 : vector<1x128xf32> to vector<128xf32>
    %9 = vector.shape_cast %8 : vector<128xf32> to vector<1x128xf32>
    %10 = vector.broadcast %9 : vector<1x128xf32> to vector<16x128xf32>
    %11 = arith.addf %6, %10 : vector<16x128xf32>
    %cst_10 = arith.constant 0.000000e+00 : f32
    %12 = vector.broadcast %cst_10 : f32 to vector<16x128xf32>
    %13 = arith.maximumf %11, %12 : vector<16x128xf32>
    %c0_11 = arith.constant 0 : index
    %c0_12 = arith.constant 0 : index
    %14 = vector.load %arg8[%c0_11, %c0_12] : memref<16x128xf32, #tpu.memory_space<vmem>>, vector<16x128xf32>
    tpu.vector_store %arg8[%c0_11, %c0_12], %13 {strides = array<i32>} : memref<16x128xf32, #tpu.memory_space<vmem>>, vector<16x128xf32>,
    %c0_13 = arith.constant 0 : index
    %c0_14 = arith.constant 0 : index
    %15 = tpu.strided_load %arg1[%c0_13, %c0_14] {strides = array<i32: 2, 1>} : memref<16x128xf32, #tpu.memory_space<vmem>>, vector<8x128xf32>
    %c1 = arith.constant 1 : index
    %c0_15 = arith.constant 0 : index
    %16 = tpu.strided_load %arg1[%c1, %c0_15] {strides = array<i32: 2, 1>} : memref<16x128xf32, #tpu.memory_space<vmem>>, vector<8x128xf32>
    %cst_16 = arith.constant 0.000000e+00 : f32
    %17 = vector.broadcast %cst_16 : f32 to vector<1x128xf32>
    %18 = vector.extract_strided_slice %16 {offsets = [0, 0], sizes = [7, 128], strides = [1, 1]} : vector<8x128xf32> to vector<7x128xf32>
    %19 = tpu.concatenate %17, %18 in 0 : vector<1x128xf32>, vector<7x128xf32> -> vector<8x128xf32>
    %20 = tpu.concatenate %19, %15, %16 in 1 : vector<8x128xf32>, vector<8x128xf32>, vector<8x128xf32> -> vector<8x384xf32>
    %c0_17 = arith.constant 0 : index
    %c0_18 = arith.constant 0 : index
    %21 = vector.load %arg5[%c0_17, %c0_18] : memref<384x128xf32, #tpu.memory_space<vmem>>, vector<384x128xf32>
    %cst_19 = arith.constant dense<0.000000e+00> : vector<8x128xf32>
    %22 = tpu.matmul %20, %21, %cst_19 {dimension_numbers = #tpu.dot_dimension_numbers<[1], [0], [0], [1], [0, 0, 1, 1], [], []>} : vector<8x384xf32>, vector<384x128xf32>, vector<8x128xf32> -> vector<8x128xf32>
    %23 = arith.addf %1, %22 : vector<8x128xf32>
    %c0_20 = arith.constant 0 : index
    %c0_21 = arith.constant 0 : index
    %24 = vector.load %arg7[%c0_20, %c0_21] : memref<1x128xf32, #tpu.memory_space<vmem>>, vector<1x128xf32>
    %25 = vector.shape_cast %24 : vector<1x128xf32> to vector<128xf32>
    %26 = vector.shape_cast %25 : vector<128xf32> to vector<1x128xf32>
    %27 = vector.broadcast %26 : vector<1x128xf32> to vector<8x128xf32>
    %28 = arith.addf %23, %27 : vector<8x128xf32>
    %cst_22 = arith.constant 0.000000e+00 : f32
    %29 = vector.broadcast %cst_22 : f32 to vector<8x128xf32>
    %30 = arith.maximumf %28, %29 : vector<8x128xf32>
    %c0_23 = arith.constant 0 : index
    %c0_24 = arith.constant 0 : index
    %31 = vector.load %arg9[%c0_23, %c0_24] : memref<8x128xf32, #tpu.memory_space<vmem>>, vector<8x128xf32>
    tpu.vector_store %arg9[%c0_23, %c0_24], %30 {strides = array<i32>} : memref<8x128xf32, #tpu.memory_space<vmem>>, vector<8x128xf32>,
    return
  }
  func.func @transform_0(%arg0: i32) -> (i32, i32) {
    %c0_i32 = arith.constant 0 : i32
    %c0_i32_0 = arith.constant 0 : i32
    %c0_i32_1 = arith.constant 0 : i32
    return %c0_i32, %c0_i32_0 : i32, i32
  }
  func.func @transform_1(%arg0: i32) -> (i32, i32) {
    %c0_i32 = arith.constant 0 : i32
    %c0_i32_0 = arith.constant 0 : i32
    %c0_i32_1 = arith.constant 0 : i32
    return %c0_i32, %c0_i32_0 : i32, i32
  }
  func.func @transform_2(%arg0: i32) -> (i32, i32) {
    %c0_i32 = arith.constant 0 : i32
    %c0_i32_0 = arith.constant 0 : i32
    %c0_i32_1 = arith.constant 0 : i32
    return %c0_i32, %c0_i32_0 : i32, i32
  }
  func.func @transform_3(%arg0: i32) -> (i32, i32) {
    %c0_i32 = arith.constant 0 : i32
    %c0_i32_0 = arith.constant 0 : i32
    %c0_i32_1 = arith.constant 0 : i32
    return %c0_i32, %c0_i32_0 : i32, i32
  }
  func.func @transform_4(%arg0: i32) -> (i32, i32) {
    %c0_i32 = arith.constant 0 : i32
    %c0_i32_0 = arith.constant 0 : i32
    %c0_i32_1 = arith.constant 0 : i32
    return %c0_i32, %c0_i32_0 : i32, i32
  }
  func.func @transform_5(%arg0: i32) -> (i32, i32) {
    %c0_i32 = arith.constant 0 : i32
    %c0_i32_0 = arith.constant 0 : i32
    %c0_i32_1 = arith.constant 0 : i32
    return %c0_i32, %c0_i32_0 : i32, i32
  }
  func.func @transform_6(%arg0: i32) -> (i32, i32) {
    %c0_i32 = arith.constant 0 : i32
    %c0_i32_0 = arith.constant 0 : i32
    %c0_i32_1 = arith.constant 0 : i32
    return %c0_i32, %c0_i32_0 : i32, i32
  }
  func.func @transform_7(%arg0: i32) -> (i32, i32) {
    %c0_i32 = arith.constant 0 : i32
    %c0_i32_0 = arith.constant 0 : i32
    %c0_i32_1 = arith.constant 0 : i32
    return %c0_i32, %c0_i32_0 : i32, i32
  }
  func.func @transform_8(%arg0: i32) -> (i32, i32) {
    %c0_i32 = arith.constant 0 : i32
    %c0_i32_0 = arith.constant 0 : i32
    %c0_i32_1 = arith.constant 0 : i32
    return %c0_i32, %c0_i32_0 : i32, i32
  }
}

</mosaic_0001>

<bundles_post_ra>
// kernel: fuse_layers_forward.1
= control target key start
LH: loop header
LB: loop body
LE: loop exit
PB: predicated region body
PF: predicated region fallthrough
CT: control target
= control target key end

     0   :  { %vm117_vm0 = vcmask 1040384   ;;  %vm69_vm2 = vcmask 64512   ;;  %s527_s2 = inlined_call_operand.vmem [shape: f32[128,128], index: 2, kind: input, shape index: {}]   ;;  %s528_s4 = inlined_call_operand.vmem [shape: f32[384,128], index: 4, kind: input, shape index: {}]   ;;  %s529_s1 = inlined_call_operand.vmem [shape: f32[8,128], index: 1, kind: input, shape index: {}]   ;;  %s530_s5 = inlined_call_operand.vmem [shape: f32[1,128], index: 5, kind: input, shape index: {}]   ;;  %s531_s0 = inlined_call_operand.vmem [shape: f32[16,128], index: 0, kind: input, shape index: {}]   ;;  %s532_s3 = inlined_call_operand.vmem [shape: f32[16,8], index: 3, kind: input, shape index: {}]   ;;  %s533_s6 = inlined_call_operand.vmem [shape: f32[1,128], index: 6, kind: input, shape index: {}]   ;;  %s534_s7 = inlined_call_operand.vmem [shape: f32[16,128], index: 7, kind: output, shape index: {0}]   ;;  %s535_s8 = inlined_call_operand.vmem [shape: f32[8,128], index: 8, kind: output, shape index: {1}]  }
   0x1   :  { %v46_v0 = vld [vmem:[%s527_s2 + $0x78] sm:$0xff]  ;;  %v45_v1 = vld [vmem:[%s527_s2 + $0x70] sm:$0xff]  ;;  %v44_v2 = vld [vmem:[%s527_s2 + $0x68] sm:$0xff] }
   0x2   :  { %47 = vmatpush.msra.mxu0 %v46_v0  ;;  %v43_v3 = vld [vmem:[%s527_s2 + $0x60] sm:$0xff]  ;;  %v42_v4 = vld [vmem:[%s527_s2 + $0x58] sm:$0xff]  ;;  %v133_v7 = vld [vmem:[%s528_s4 + $0x70] sm:$0xff] }
   0x3   :  { %v134_v5 = vld [vmem:[%s528_s4 + $0x78] sm:$0xff]  ;;  %v149_v8 = vld [vmem:[%s528_s4 + $0xf0] sm:$0xff]  ;;  %v132_v9 = vld [vmem:[%s528_s4 + $0x68] sm:$0xff] }
   0x4   :  { %48 = vmatpush.msra.mxu0 %v45_v1  ;;  %167 = vmatpush.msra.mxu2 %v134_v5  ;;  %v150_v6 = vld [vmem:[%s528_s4 + $0xf8] sm:$0xff]  ;;  %v41_v10 = vld [vmem:[%s527_s2 + $0x50] sm:$0xff]  ;;  %v148_v11 = vld [vmem:[%s528_s4 + $0xe8] sm:$0xff] }
   0x5   :  { %187 = vmatpush.msra.mxu3 %v150_v6  ;;  %v40_v12 = vld [vmem:[%s527_s2 + $0x48] sm:$0xff]  ;;  %v39_v13 = vld [vmem:[%s527_s2 + $0x40] sm:$0xff]  ;;  %v38_v14 = vld [vmem:[%s527_s2 + $0x38] sm:$0xff] }
   0x6   :  { %49 = vmatpush.msra.mxu0 %v44_v2  ;;  %168 = vmatpush.msra.mxu2 %v133_v7  ;;  %v37_v15 = vld [vmem:[%s527_s2 + $0x30] sm:$0xff]  ;;  %v36_v16 = vld [vmem:[%s527_s2 + $0x28] sm:$0xff]  ;;  %v35_v17 = vld [vmem:[%s527_s2 + $0x20] sm:$0xff] }
   0x7   :  { %188 = vmatpush.msra.mxu3 %v149_v8  ;;  %v34_v18 = vld [vmem:[%s527_s2 + $0x18] sm:$0xff]  ;;  %v33_v19 = vld [vmem:[%s527_s2 + $0x10] sm:$0xff]  ;;  %v32_v20 = vld [vmem:[%s527_s2 + $0x8] sm:$0xff] }
   0x8   :  { %50 = vmatpush.msra.mxu0 %v43_v3  ;;  %169 = vmatpush.msra.mxu2 %v132_v9  ;;  %v31_v21 = vld [vmem:[%s527_s2] sm:$0xff]  ;;  %v130_v25 = vld [vmem:[%s528_s4 + $0x58] sm:$0xff]  ;;  %v129_v27 = vld [vmem:[%s528_s4 + $0x50] sm:$0xff] }
   0x9   :  { %189 = vmatpush.msra.mxu3 %v148_v11  ;;  %v364_v22 = vld [vmem:[%s529_s1] sm:$0xff]  ;;  %v146_v26 = vld [vmem:[%s528_s4 + $0xd8] sm:$0xff]  ;;  %v145_v28 = vld [vmem:[%s528_s4 + $0xd0] sm:$0xff] }
   0xa   :  { %51 = vmatpush.msra.mxu0 %v42_v4  ;;  %v131_v23 = vld [vmem:[%s528_s4 + $0x60] sm:$0xff]  ;;  %v128_v29 = vld [vmem:[%s528_s4 + $0x48] sm:$0xff]  ;;  %v126_v33 = vld [vmem:[%s528_s4 + $0x38] sm:$0xff] }
   0xb   :  { %v147_v24 = vld [vmem:[%s528_s4 + $0xe0] sm:$0xff]  ;;  %170 = vmatpush.msra.mxu2 %v131_v23  ;;  %v144_v30 = vld [vmem:[%s528_s4 + $0xc8] sm:$0xff]  ;;  %v142_v34 = vld [vmem:[%s528_s4 + $0xb8] sm:$0xff] }
   0xc   :  { %52 = vmatpush.msra.mxu0 %v41_v10  ;;  %190 = vmatpush.msra.mxu3 %v147_v24  ;;  %v127_v31 = vld [vmem:[%s528_s4 + $0x40] sm:$0xff]  ;;  %v125_v35 = vld [vmem:[%s528_s4 + $0x30] sm:$0xff]  ;;  %v124_v37 = vld [vmem:[%s528_s4 + $0x28] sm:$0xff] }
   0xd   :  { %171 = vmatpush.msra.mxu2 %v130_v25  ;;  %v143_v32 = vld [vmem:[%s528_s4 + $0xc0] sm:$0xff]  ;;  %v141_v36 = vld [vmem:[%s528_s4 + $0xb0] sm:$0xff]  ;;  %v140_v38 = vld [vmem:[%s528_s4 + $0xa8] sm:$0xff] }
   0xe   :  { %53 = vmatpush.msra.mxu0 %v40_v12  ;;  %191 = vmatpush.msra.mxu3 %v146_v26  ;;  %v123_v39 = vld [vmem:[%s528_s4 + $0x20] sm:$0xff]  ;;  %v122_v41 = vld [vmem:[%s528_s4 + $0x18] sm:$0xff]  ;;  %v121_v43 = vld [vmem:[%s528_s4 + $0x10] sm:$0xff] }
   0xf   :  { %172 = vmatpush.msra.mxu2 %v129_v27  ;;  %v139_v40 = vld [vmem:[%s528_s4 + $0xa0] sm:$0xff]  ;;  %v138_v42 = vld [vmem:[%s528_s4 + $0x98] sm:$0xff]  ;;  %v137_v44 = vld [vmem:[%s528_s4 + $0x90] sm:$0xff] }
  0x10   :  { %54 = vmatpush.msra.mxu0 %v39_v13  ;;  %192 = vmatpush.msra.mxu3 %v145_v28  ;;  %v120_v45 = vld [vmem:[%s528_s4 + $0x8] sm:$0xff]  ;;  %v119_v47 = vld [vmem:[%s528_s4] sm:$0xff]  ;;  %vm246_vm1 = vmneg %vm117_vm0 }
  0x11   :  { %173 = vmatpush.msra.mxu2 %v128_v29  ;;  %v136_v46 = vld [vmem:[%s528_s4 + $0x88] sm:$0xff]  ;;  %v135_v48 = vld [vmem:[%s528_s4 + $0x80] sm:$0xff]  ;;  %v166_v52 = vld [vmem:[%s528_s4 + $0x178] sm:$0xff] }
  0x12   :  { %55 = vmatpush.msra.mxu0 %v38_v14  ;;  %193 = vmatpush.msra.mxu3 %v144_v30  ;;  %v245_v49 = vld [vmem:[%s531_s0 + $0x1] ss:$2 sm:$0xff]  ;;  %v111_v51 = vld [vmem:[%s531_s0] ss:$2 sm:$0xff]  ;;  %v165_v55 = vld [vmem:[%s528_s4 + $0x170] sm:$0xff] }
  0x13   :  { %174 = vmatpush.msra.mxu2 %v127_v31  ;;  %v115_v50 = vrot.slane %v245_v49, 7  ;;  %v67_v54 = vld [vmem:[%s532_s3] sm:$0xff]  ;;  %v164_v56 = vld [vmem:[%s528_s4 + $0x168] sm:$0xff]  ;;  %v162_v58 = vld [vmem:[%s528_s4 + $0x158] sm:$0xff] }
  0x14   :  { %56 = vmatpush.msra.mxu0 %v37_v15  ;;  %194 = vmatpush.msra.mxu3 %v143_v32  ;;  %v163_v57 = vld [vmem:[%s528_s4 + $0x160] sm:$0xff]  ;;  %v68_v59 = vld [vmem:[%s532_s3 + $0x8] sm:$0xff]  ;;  %v161_v60 = vld [vmem:[%s528_s4 + $0x150] sm:$0xff] }
  0x15   :  { %175 = vmatpush.msra.mxu2 %v126_v33  ;;  %v160_v61 = vld [vmem:[%s528_s4 + $0x148] sm:$0xff]  ;;  %v159_v62 = vld [vmem:[%s528_s4 + $0x140] sm:$0xff]  ;;  %v158_v63 = vld [vmem:[%s528_s4 + $0x138] sm:$0xff] }
  0x16   :  { %57 = vmatpush.msra.mxu0 %v36_v16  ;;  %195 = vmatpush.msra.mxu3 %v142_v34  ;;  %v157_v0 = vld [vmem:[%s528_s4 + $0x130] sm:$0xff]  ;;  %v156_v1 = vld [vmem:[%s528_s4 + $0x128] sm:$0xff]  ;;  %v155_v2 = vld [vmem:[%s528_s4 + $0x120] sm:$0xff] }
  0x17   :  { %176 = vmatpush.msra.mxu2 %v125_v35  ;;  %v154_v3 = vld [vmem:[%s528_s4 + $0x118] sm:$0xff]  ;;  %v153_v4 = vld [vmem:[%s528_s4 + $0x110] sm:$0xff]  ;;  %v152_v5 = vld [vmem:[%s528_s4 + $0x108] sm:$0xff] }
  0x18   :  { %58 = vmatpush.msra.mxu0 %v35_v17  ;;  %196 = vmatpush.msra.mxu3 %v141_v36  ;;  %v151_v6 = vld [vmem:[%s528_s4 + $0x100] sm:$0xff]  ;;  %v29_v13 = vld [vmem:[%s531_s0 + $0x8] sm:$0xff] }
  0x19   :  { %177 = vmatpush.msra.mxu2 %v124_v37  ;;  %v28_v7 = vld [vmem:[%s531_s0] sm:$0xff] }
  0x1a   :  { %59 = vmatpush.msra.mxu0 %v34_v18  ;;  %197 = vmatpush.msra.mxu3 %v140_v38  ;;  %v248_v8 = vld [vmem:[%s530_s5] ss:$0 sm:$0xff] }
  0x1b   :  { %178 = vmatpush.msra.mxu2 %v123_v39  ;;  %v249_v24 = vld [vmem:[%s533_s6] ss:$0 sm:$0xff] }
  0x1c   :  { %60 = vmatpush.msra.mxu0 %v33_v19  ;;  %198 = vmatpush.msra.mxu3 %v139_v40 }
  0x1d   :  { %179 = vmatpush.msra.mxu2 %v122_v41 }
  0x1e   :  { %61 = vmatpush.msra.mxu0 %v32_v20  ;;  %199 = vmatpush.msra.mxu3 %v138_v42 }
  0x1f   :  { %180 = vmatpush.msra.mxu2 %v121_v43 }
  0x20   :  { %62 = vmatpush.msra.mxu0 %v31_v21  ;;  %200 = vmatpush.msra.mxu3 %v137_v44 }
  0x21   :  { %63 = vmatmul.f32.vlgmr.msra.gmra.mxu0 %v364_v22  ;;  %181 = vmatpush.msra.mxu2 %v120_v45 }
  0x22   :  { %201 = vmatpush.msra.mxu3 %v136_v46 }
  0x23   :  { %182 = vmatpush.msra.mxu2 %v119_v47 }
  0x24   :  { %202 = vmatpush.msra.mxu3 %v135_v48  ;;  %247 = vmatmul.msk.f32.vlgmr.msra.gmra.mxu2 %vm246_vm1, %v115_v50 }
  0x25   :  { %203 = vmatmul.f32.vlgmr.msra.gmra.mxu3 %v111_v51 }
  0x9e   :  { %v64_v53 = vpop.f32.mrf.mxu0 }
  0x9f   :  { %91 = vmatpush.msra.mxu1 %v64_v53 }
  0xa0   :  { %243 = vmatmul.msk.f32.vlgmr.msra.gmra.mxu1 %vm69_vm2, %v67_v54 }
  0xa1   :  { %207 = vmatpush.msrb.mxu1 %v166_v52 }
  0xa3   :  { %208 = vmatpush.msrb.mxu1 %v165_v55 }
  0xa5   :  { %209 = vmatpush.msrb.mxu1 %v164_v56 }
  0xa7   :  { %210 = vmatpush.msrb.mxu1 %v163_v57  ;;  %v184_v18 = vpop.f32.mrf.mxu2 }
  0xa8   :  { %244 = vmatmul.msk.f32.gmra.mxu1 %vm69_vm2, %v68_v59  ;;  %v204_v19 = vpop.f32.mrf.mxu3 }
  0xa9   :  { %211 = vmatpush.msrb.mxu1 %v162_v58  ;;  %v205_v20 = vadd.f32 %v204_v19, %v184_v18 }
  0xab   :  { %212 = vmatpush.msrb.mxu1 %v161_v60 }
  0xad   :  { %213 = vmatpush.msrb.mxu1 %v160_v61 }
  0xaf   :  { %214 = vmatpush.msrb.mxu1 %v159_v62 }
  0xb1   :  { %215 = vmatpush.msrb.mxu1 %v158_v63 }
  0xb3   :  { %216 = vmatpush.msrb.mxu1 %v157_v0 }
  0xb5   :  { %217 = vmatpush.msrb.mxu1 %v156_v1 }
  0xb7   :  { %218 = vmatpush.msrb.mxu1 %v155_v2 }
  0xb9   :  { %219 = vmatpush.msrb.mxu1 %v154_v3 }
  0xbb   :  { %220 = vmatpush.msrb.mxu1 %v153_v4 }
  0xbd   :  { %221 = vmatpush.msrb.mxu1 %v152_v5 }
  0xbf   :  { %222 = vmatpush.msrb.mxu1 %v151_v6 }
  0xc0   :  { %223 = vmatmul.f32.vlgmr.msrb.gmra.mxu1 %v245_v49 }
 0x11d   :  { %v93_v9 = vpop.f32.mrf.mxu1 }
 0x11e   :  { %v99_v10 = vadd.f32 %v93_v9, %v28_v7 }
 0x120   :  { %v105_v11 = vadd.f32 %v248_v8, %v99_v10 }
 0x122   :  { %v107_v12 = vmax.f32 %v105_v11, 0.0 }
 0x124   :  { %109 = vst [vmem:[%s534_s7] sm:$0xff] %v107_v12 }
 0x125   :  { %v96_v14 = vpop.f32.mrf.mxu1 }
 0x126   :  { %v100_v15 = vadd.f32 %v96_v14, %v29_v13 }
 0x128   :  { %v106_v16 = vadd.f32 %v248_v8, %v100_v15 }
 0x12a   :  { %v108_v17 = vmax.f32 %v106_v16, 0.0 }
 0x12c   :  { %110 = vst [vmem:[%s534_s7 + $0x8] sm:$0xff] %v108_v17 }
 0x13d   :  { %v224_v21 = vpop.f32.mrf.mxu1 }
 0x13e   :  { %v225_v23 = vadd.f32 %v224_v21, %v205_v20 }
 0x140   :  { %v227_v25 = vadd.f32 %v225_v23, %v364_v22 }
 0x142   :  { %v232_v26 = vadd.f32 %v249_v24, %v227_v25 }
 0x144   :  { %v233_v27 = vmax.f32 %v232_v26, 0.0 }
 0x146   :  { %234 = vst [vmem:[%s535_s8] sm:$0xff] %v233_v27 }

</bundles_post_ra>
